<compile_context>
chip_gen: v7x
topology: tpu7x:2x2x1
jax: 0.10.0
libtpu: 0.0.40
codegen_flags: <defaults>
</compile_context>

<pallas_src>
import jax
import jax.numpy as jnp
from jax import lax
from jax.experimental import pallas as pl
from jax.experimental.pallas import tpu as pltpu


# ----------------------------- layout glue (free reshapes) ------------------

def _selector(inputs, index):
    if not isinstance(index, (list, tuple)):
        return inputs[index]
    for ind in index:
        inputs = inputs[ind]
    return inputs


def _viewed_fields(fields):
    """torch-style .view of each field to 5-D (B, C, f_i, H, W)."""
    out = []
    for f in fields:
        if f.ndim == 6:
            f = f.reshape(f.shape[0], f.shape[1], f.shape[2] * f.shape[3],
                          *f.shape[4:])
        else:
            f = f.reshape(f.shape[0], f.shape[1], f.shape[2], *f.shape[3:])
        out.append(f)
    return out


def _concat_heads(heads):
    if not heads:
        return None
    if len(heads) == 1:
        return heads[0]
    return jnp.concatenate(heads, axis=1)


def _index_field(h, w, dtype):
    """Flattened equivalent of index_field_torch: (1, 2, H*W) with [x, y]."""
    lane = jnp.arange(h * w, dtype=jnp.int32)
    col = (lane % w).astype(dtype)      # x coordinate (fast / W axis)
    row = (lane // w).astype(dtype)     # y coordinate (slow / H axis)
    return jnp.stack([col, row], axis=0).reshape(1, 2, h * w)


def _rows_per_block(n_rows, f_sizes, hw, itemsize, target_bytes=2 << 20):
    """Pick the (B*C) row-block size: a couple of MiB of double-buffered VMEM
    per block, at least 2 grid steps when possible (v7x megacore sharding),
    and an exact divisor of n_rows (no ragged trailing block)."""
    pad8 = lambda f: -(-f // 8) * 8     # sublane padding of the F dim
    per_row = 2 * (sum(pad8(f) for f in f_sizes) + pad8(sum(f_sizes))) * hw * itemsize
    t = max(1, target_bytes // max(per_row, 1))
    if n_rows >= 2:
        t = min(t, n_rows // 2)         # keep >= 2 parallel grid steps
    t = max(1, min(int(t), n_rows))
    while n_rows % t:
        t -= 1
    return int(t)


# ----------------------------- fused Pallas kernel ---------------------------

def _make_fused_kernel(f_sizes):
    """Kernel: fused field-concat + index-field add on F slices 1:3.

    Args (refs): idx_ref (1, 2, HW), one ref per field (T, f_i, HW),
                 out_ref (T, F, HW).
    """
    offsets = []
    off = 0
    for fs in f_sizes:
        offsets.append(off)
        off += fs

    def kernel(idx_ref, *refs):
        in_refs = refs[:len(f_sizes)]
        out_ref = refs[len(f_sizes)]
        for ref, fs, lo in zip(in_refs, f_sizes, offsets):
            hi = lo + fs
            if hi <= 1 or lo >= 3:
                # field does not touch the regression slices: plain copy-through
                out_ref[:, lo:hi, :] = ref[...]
            elif lo == 1 and hi == 3:
                # common case: the 2-wide vector field exactly spans slices 1:3
                out_ref[:, lo:hi, :] = ref[...] + idx_ref[...]
            else:
                # general fallback: per-slice writes, add col/row where needed
                x = ref[...]
                for j in range(fs):
                    dst = lo + j
                    piece = x[:, j:j + 1, :]
                    if dst == 1:
                        piece = piece + idx_ref[:, 0:1, :]
                    elif dst == 2:
                        piece = piece + idx_ref[:, 1:2, :]
                    out_ref[:, dst:dst + 1, :] = piece

    return kernel


def _fused_concat_index_add(fields):
    """Equivalent of concat_fields(fields) followed by
    out[:, :, 1:3] += index_field, done in a single HBM read + write."""
    fields = _viewed_fields(fields)                 # all 5-D: (B, C, f_i, H, W)
    B, C = fields[0].shape[:2]
    H, W = fields[0].shape[-2:]
    hw = H * W
    f_sizes = tuple(int(f.shape[2]) for f in fields)
    f_total = sum(f_sizes)
    dtype = fields[0].dtype
    n_rows = B * C

    # contiguous (bitcast) reshapes: (B, C, f, H, W) -> (B*C, f, H*W) lane-dense
    flat = [f.reshape(n_rows, fs, hw) for f, fs in zip(fields, f_sizes)]
    idx = _index_field(H, W, dtype)

    t = _rows_per_block(n_rows, f_sizes, hw, jnp.dtype(dtype).itemsize)
    grid = n_rows // t

    in_specs = [pl.BlockSpec((1, 2, hw), lambda i: (0, 0, 0))]   # loop-invariant
    in_specs += [pl.BlockSpec((t, fs, hw), lambda i: (i, 0, 0)) for fs in f_sizes]

    out = pl.pallas_call(
        _make_fused_kernel(f_sizes),
        out_shape=jax.ShapeDtypeStruct((n_rows, f_total, hw), dtype),
        grid_spec=pltpu.PrefetchScalarGridSpec(
            num_scalar_prefetch=0,
            grid=(grid,),
            in_specs=in_specs,
            out_specs=pl.BlockSpec((t, f_total, hw), lambda i: (i, 0, 0)),
        ),
        compiler_params=pltpu.CompilerParams(
            dimension_semantics=("parallel",)),
    )(idx, *flat)
    return out.reshape(B, C, f_total, H, W)


# ----------------------------- forward pass ----------------------------------

def cif_pan_cent_collector_forward(heads, cif_indices):
    """JAX/Pallas equivalent of CifPanCentCollector.forward."""
    heads_cent = heads[2]

    # Adding the index field per selected head before the channel concat is
    # equivalent to the original (the add acts on F slices, independent of C).
    cif_heads = [_fused_concat_index_add(_selector(heads, hi))
                 for hi in cif_indices]
    cif_head = _concat_heads(cif_heads)

    cif_cent_head = _fused_concat_index_add(heads_cent)

    # Original: torch.zeros(cif_cent_head.shape) -> default float32. Kept out
    # of the kernel so it does not double the output HBM write traffic.
    cif_ball_head = jnp.zeros(cif_cent_head.shape, jnp.float32)

    return (cif_head, heads[1], cif_ball_head, cif_cent_head)


# --------------------------------- main ---------------------------------------

if __name__ == "__main__":
    key = jax.random.PRNGKey(0)
    B, C, H, W = 2, 4, 16, 16           # keypoint cif head: 4 classes
    C_cent = 1                          # centroid head: 1 class

    k = jax.random.split(key, 8)
    # heads[0]: cif head = list of field tensors (5-D and a 6-D one to
    #           exercise the 6-D view path of concat_fields)
    cif_conf = jax.random.normal(k[0], (B, C, 1, H, W), jnp.float32)
    cif_vec = jax.random.normal(k[1], (B, C, 1, 2, H, W), jnp.float32)   # 6-D
    cif_scale = jax.random.normal(k[2], (B, C, 1, H, W), jnp.float32)
    head0 = [cif_conf, cif_vec, cif_scale]

    # heads[1]: passed through untouched (e.g. a pan/semantic head)
    head1 = jax.random.normal(k[3], (B, 17, H, W), jnp.float32)

    # heads[2]: centroid head fields
    cent_conf = jax.random.normal(k[4], (B, C_cent, 1, H, W), jnp.float32)
    cent_vec = jax.random.normal(k[5], (B, C_cent, 1, 2, H, W), jnp.float32)
    cent_scale = jax.random.normal(k[6], (B, C_cent, 1, H, W), jnp.float32)
    head2 = [cent_conf, cent_vec, cent_scale]

    heads = [head0, head1, head2]
    cif_indices = [0]

    out = cif_pan_cent_collector_forward(heads, cif_indices)
    out = jax.block_until_ready(out)
    cif_head, pan_head, cif_ball_head, cif_cent_head = out

    # pure-jnp reference check
    def ref_concat(fields):
        return jnp.concatenate(_viewed_fields(fields), axis=2)

    def ref_add(x):
        col = lax.broadcasted_iota(jnp.float32, (H, W), 1)
        row = lax.broadcasted_iota(jnp.float32, (H, W), 0)
        return x.at[:, :, 1].add(col).at[:, :, 2].add(row)

    assert cif_head.shape == (B, C, 4, H, W)
    assert cif_cent_head.shape == (B, C_cent, 4, H, W)
    assert cif_ball_head.shape == cif_cent_head.shape
    assert jnp.allclose(cif_head, ref_add(ref_concat(head0)), atol=1e-6)
    assert jnp.allclose(cif_cent_head, ref_add(ref_concat(head2)), atol=1e-6)
    assert jnp.all(cif_ball_head == 0)
    assert bool(jnp.array_equal(pan_head, head1))

    print("KERNEL_OK")
</pallas_src>

<mosaic_0001>
module attributes {stable_mosaic.version = 11 : i64} {
  func.func @kernel(%arg0: i32, %arg1: memref<1x2x256xf32, #tpu.memory_space<vmem>>, %arg2: memref<4x1x256xf32, #tpu.memory_space<vmem>>, %arg3: memref<4x2x256xf32, #tpu.memory_space<vmem>>, %arg4: memref<4x1x256xf32, #tpu.memory_space<vmem>>, %arg5: memref<4x4x256xf32, #tpu.memory_space<vmem>>) attributes {dimension_semantics = [#tpu.dimension_semantics<parallel>], iteration_bounds = array<i64: 2>, scalar_prefetch = 0 : i64, scratch_operands = 0 : i64, tpu.core_type = #tpu.core_type<tc>, window_params = [{pipeline_mode = #tpu.pipeline_mode<synchronous>, transform_indices = @transform_0, window_bounds = array<i64: 1, 2, 256>}, {transform_indices = @transform_1, window_bounds = array<i64: 4, 1, 256>}, {transform_indices = @transform_2, window_bounds = array<i64: 4, 2, 256>}, {transform_indices = @transform_3, window_bounds = array<i64: 4, 1, 256>}, {transform_indices = @transform_4, window_bounds = array<i64: 4, 4, 256>}]} {
    %c0 = arith.constant 0 : index
    %c0_0 = arith.constant 0 : index
    %c0_1 = arith.constant 0 : index
    %0 = vector.load %arg2[%c0, %c0_0, %c0_1] : memref<4x1x256xf32, #tpu.memory_space<vmem>>, vector<4x1x256xf32>
    %c0_2 = arith.constant 0 : index
    %c0_3 = arith.constant 0 : index
    %c0_4 = arith.constant 0 : index
    %1 = vector.load %arg5[%c0_2, %c0_3, %c0_4] : memref<4x4x256xf32, #tpu.memory_space<vmem>>, vector<4x1x256xf32>
    tpu.vector_store %arg5[%c0_2, %c0_3, %c0_4], %0 {strides = array<i32>} : memref<4x4x256xf32, #tpu.memory_space<vmem>>, vector<4x1x256xf32>,
    %c0_5 = arith.constant 0 : index
    %c0_6 = arith.constant 0 : index
    %c0_7 = arith.constant 0 : index
    %2 = vector.load %arg3[%c0_5, %c0_6, %c0_7] : memref<4x2x256xf32, #tpu.memory_space<vmem>>, vector<4x2x256xf32>
    %c0_8 = arith.constant 0 : index
    %c0_9 = arith.constant 0 : index
    %c0_10 = arith.constant 0 : index
    %3 = vector.load %arg1[%c0_8, %c0_9, %c0_10] : memref<1x2x256xf32, #tpu.memory_space<vmem>>, vector<1x2x256xf32>
    %4 = vector.broadcast %3 : vector<1x2x256xf32> to vector<4x2x256xf32>
    %5 = arith.addf %2, %4 : vector<4x2x256xf32>
    %c0_11 = arith.constant 0 : index
    %c1 = arith.constant 1 : index
    %c0_12 = arith.constant 0 : index
    %6 = vector.load %arg5[%c0_11, %c1, %c0_12] : memref<4x4x256xf32, #tpu.memory_space<vmem>>, vector<4x2x256xf32>
    tpu.vector_store %arg5[%c0_11, %c1, %c0_12], %5 {strides = array<i32>} : memref<4x4x256xf32, #tpu.memory_space<vmem>>, vector<4x2x256xf32>,
    %c0_13 = arith.constant 0 : index
    %c0_14 = arith.constant 0 : index
    %c0_15 = arith.constant 0 : index
    %7 = vector.load %arg4[%c0_13, %c0_14, %c0_15] : memref<4x1x256xf32, #tpu.memory_space<vmem>>, vector<4x1x256xf32>
    %c0_16 = arith.constant 0 : index
    %c3 = arith.constant 3 : index
    %c0_17 = arith.constant 0 : index
    %8 = vector.load %arg5[%c0_16, %c3, %c0_17] : memref<4x4x256xf32, #tpu.memory_space<vmem>>, vector<4x1x256xf32>
    tpu.vector_store %arg5[%c0_16, %c3, %c0_17], %7 {strides = array<i32>} : memref<4x4x256xf32, #tpu.memory_space<vmem>>, vector<4x1x256xf32>,
    return
  }
  func.func @transform_0(%arg0: i32) -> (i32, i32, i32) {
    %c0_i32 = arith.constant 0 : i32
    %c0_i32_0 = arith.constant 0 : i32
    %c0_i32_1 = arith.constant 0 : i32
    %c0_i32_2 = arith.constant 0 : i32
    return %c0_i32, %c0_i32_0, %c0_i32_1 : i32, i32, i32
  }
  func.func @transform_1(%arg0: i32) -> (i32, i32, i32) {
    %c0_i32 = arith.constant 0 : i32
    %c0_i32_0 = arith.constant 0 : i32
    %c0_i32_1 = arith.constant 0 : i32
    return %arg0, %c0_i32, %c0_i32_0 : i32, i32, i32
  }
  func.func @transform_2(%arg0: i32) -> (i32, i32, i32) {
    %c0_i32 = arith.constant 0 : i32
    %c0_i32_0 = arith.constant 0 : i32
    %c0_i32_1 = arith.constant 0 : i32
    return %arg0, %c0_i32, %c0_i32_0 : i32, i32, i32
  }
  func.func @transform_3(%arg0: i32) -> (i32, i32, i32) {
    %c0_i32 = arith.constant 0 : i32
    %c0_i32_0 = arith.constant 0 : i32
    %c0_i32_1 = arith.constant 0 : i32
    return %arg0, %c0_i32, %c0_i32_0 : i32, i32, i32
  }
  func.func @transform_4(%arg0: i32) -> (i32, i32, i32) {
    %c0_i32 = arith.constant 0 : i32
    %c0_i32_0 = arith.constant 0 : i32
    %c0_i32_1 = arith.constant 0 : i32
    return %arg0, %c0_i32, %c0_i32_0 : i32, i32, i32
  }
}

</mosaic_0001>

<bundles_post_ra>
// kernel: tpu_custom_call.1
= control target key start
LH: loop header
LB: loop body
LE: loop exit
PB: predicated region body
PF: predicated region fallthrough
CT: control target
= control target key end

     0   :  { %s1216_s0 = inlined_call_operand.hbm [shape: f32[1,2,256], index: 0, kind: input, shape index: {}]   ;;  %s1217_s1 = inlined_call_operand.hbm [shape: f32[8,1,256], index: 1, kind: input, shape index: {}]   ;;  %s1218_s2 = inlined_call_operand.hbm [shape: f32[8,2,256], index: 2, kind: input, shape index: {}]   ;;  %s1219_s3 = inlined_call_operand.hbm [shape: f32[8,1,256], index: 3, kind: input, shape index: {}]   ;;  %s1220_s4 = inlined_call_operand.hbm [shape: f32[8,4,256], index: 4, kind: output, shape index: {}]  }
   0x1   :  { %1235 = sst [smem:[#allocation17_spill]] %s1217_s1 }
   0x2   :  { %9 = vsyncpa [#allocation3], 0 }
   0x3   :  { %10 = vsyncpa [#allocation6], 0 }
   0x4   :  { %12 = vsyncpa [#allocation6 + $0x1], 0 }
   0x5   :  { %13 = vsyncpa [#allocation9], 0 }
   0x6   :  { %15 = vsyncpa [#allocation9 + $0x1], 0 }
   0x7   :  { %16 = vsyncpa [#allocation4], 0 }
   0x8   :  { %18 = vsyncpa [#allocation4 + $0x1], 0  ;;  %s884_s15 = smov 0   ;;  %s886_s16 = smov 0  }
   0x9   :  { %s888_s17 = smov 0   ;;  %s890_s18 = smov 0  }
   0xa LB: > { %1236 = sst [smem:[#allocation15_spill]] %s841_s17  ;;  %s905_s19 = sadd.s32 1, %s845_s18   ;;  %s845_s18 = sphi %s890_s18, %s1266_s18   ;;  %s841_s17 = sphi %s888_s17, %s1263_s17   ;;  %s837_s16 = sphi %s886_s16, %s1265_s16   ;;  %s833_s15 = sphi %s884_s15, %s1264_s15  }
   0xb   : > { %s52_s20 = sadd.s32 1, %s841_s17  ;;  %s49_s21 = ssub.s32 %s845_s18, %s905_s19 }
   0xc   : > { %p1221_p0 = scmp.ne.s32.totalorder %s841_s17, %s837_s16  ;;  %p50_p1 = scmp.eq.s32.totalorder %s49_s21, 0 }
   0xd   : > { %p60_p2 = scmp.eq.s32.totalorder %s845_s18, 0  ;;  %p610_p4 = scmp.lt.s32.totalorder %s845_s18, 2 }
   0xe   : > { %s916_s22 = scalar_select %p50_p1, %s841_s17, %s52_s20  }
   0xf   : > { %p61_p5 = por %p60_p2, %p1221_p0  ;;  %s178_s23 = sand.u32 1, %s845_s18  }
  0x10   : > { %1237 = sst [smem:[#allocation16_spill]] %s916_s22  ;;  %s923_s24 = sand.u32 1, %s841_s17  }
  0x11   : > { %s1224_s25 = sshll.u32 %s923_s24, 3  ;;  %s1225_s26 = sshll.u32 %s845_s18, 7 }
  0x12   : > { %s1238_s1 = sld [smem:[#allocation17_spill]]  ;;  %s182_s30 = scalar_lea.vmem [#allocation5], %s1224_s25 }
  0x13   : > { %s190_s5 = sshll.u32 %s182_s30, 4  ;;  %p936_p6 = pnand %p610_p4, %p61_p5  ;;  %s940_s5 = int_to_ptr.vmem [resolvable:$true] %s190_s5 }
  0x14   : > { %s942_s7 = scalar_lea.sflag [#allocation6], %s178_s23 }
  0x15   : > { %s1239_s6 = scalar_select %p936_p6, 1, 0 }
  0x16   : > { %p948_p8 = pneg %p936_p6 }
  0x18   : > { %s932_s29 = scalar_lea.hbm %s1238_s1, %s1225_s26  ;;  %s658_s12 = scalar_lea.hbm %s1238_s1, 256 }
  0x19   : > { %s653_s8 = scalar_lea.hbm %s932_s29, 128  ;;  %p659_p11 = scmp.lt.u32.totalorder %s932_s29, %s1238_s1 }
  0x1a   : > { %p654_p7 = scmp.ne.s32.totalorder %s932_s29, %s653_s8  ;;  %p660_p12 = scmp.lt.u32.totalorder %s658_s12, %s653_s8 }
  0x1b   : > { %s1240_s9 = scalar_select %p948_p8, 1, 0 }
  0x1c   : > { %p656_p9 = pnand %p948_p8, %p654_p7  ;;  %p661_p13 = por %p660_p12, %p659_p11 }
  0x1d   : > { %p662_p1 = scmp.lt.u32.totalorder %s653_s8, %s932_s29 }
  0x1e   : > { %p657_p10 = pneg %p656_p9 }
  0x1f   : > { %p663_p2 = por %p662_p1, %p661_p13 }
  0x21   : > { %p664_p4 = pnand %p663_p2, %p657_p10 }
  0x23   : > { %667 = shalt.err (!%p664_p4)
}
  0x24   : > { %s668_s20 = scalar_lea.vmem %s940_s5, 128  ;;  %s847_s21 = smov [#allocation5]  }
  0x25   : > { %p669_p5 = scmp.ne.s32.totalorder %s940_s5, %s668_s20  ;;  %s673_s23 = sshll.u32 %s847_s21, 4  ;;  %s674_s23 = int_to_ptr.vmem [resolvable:$false] %s673_s23 }
  0x26   : > { %s675_s27 = scalar_lea.vmem %s674_s23, 256  ;;  %p676_p3 = scmp.lt.s32.totalorder %s940_s5, %s674_s23 }
  0x27   : > { %p671_p7 = pnand %p669_p5, %p948_p8  ;;  %p677_p0 = scmp.lt.s32.totalorder %s675_s27, %s668_s20 }
  0x29   : > { %p672_p9 = pneg %p671_p7  ;;  %p678_p11 = por %p677_p0, %p676_p3 }
  0x2b   : > { %p679_p12 = pnand %p678_p11, %p672_p9 }
  0x2d   : > { %682 = shalt.err (!%p679_p12)
}
  0x2e   : > { %s1222_s28 = smov 32   ;;  %s1223_s30 = smov 2  }
  0x2f   : > { %598 = dma.hbm_to_vmem [thread:$0]  (!%p936_p6), %s932_s29, 128, %s940_s5, %s942_s7, %s1222_s28, %s1222_s28, %s1223_s30  }
  0x30   : > { %s976_s8 = sadd.s32 4294967295, %s845_s18   ;;  %s536_s10 = sadd.s32 4294967294, %s845_s18  }
  0x31   : > { %p65_p0 = scmp.ne.s32.totalorder %s837_s16, %s833_s15  ;;  %p1227_p3 = scmp.eq.s32.totalorder %s976_s8, 0 }
  0x32   : > { %p141_p10 = scmp.eq.s32.totalorder %s976_s8, 1  ;;  %p147_p13 = scmp.eq.s32.totalorder %s536_s10, 1 }
  0x33   : > { %p985_p1 = por %p1227_p3, %p65_p0  ;;  %p537_p2 = scmp.ge.s32.totalorder %s845_s18, 1 }
  0x34   : > { %p1242_p4 = scmp.ne.s32.totalorder %s841_s17, %s837_s16  ;;  %p997_p7 = por %p147_p13, %p65_p0 }
  0x35   : > { %s1241_s11 = scalar_select %p985_p1, 1, 0 }
  0x36   : > { %p993_p5 = por %p141_p10, %p1242_p4  ;;  %p154_p9 = scmp.lt.s32.totalorder %s845_s18, 3 }
  0x37   : > { %s1244_s5 = scalar_select %p997_p7, 1, 0 }
  0x38   : > { %s1243_s29 = scalar_select %p993_p5, 1, 0 }
  0x39   : > { %s544_s12 = sshll.u32 %s923_s24, 4  ;;  %p1003_p11 = pnand %p537_p2, %p154_p9 }
  0x3a   : > { %s850_s14 = smov [#allocation2]   ;;  %s574_s21 = sshll.u32 %s845_s18, 8 }
  0x3b   : > { %s1245_s13 = scalar_select %p1003_p11, 1, 0 }
  0x3c   : > { %s167_s20 = sshll.u32 %s850_s14, 4  ;;  %p591_p12 = pneg %p1003_p11  ;;  %s168_s20 = int_to_ptr.vmem [resolvable:$true] %s167_s20 }
  0x3d   : > { %s1013_s10 = scalar_lea.hbm %s1218_s2, %s574_s21  ;;  %s204_s28 = scalar_lea.vmem [#allocation7], %s544_s12 }
  0x3e   : > { %s212_s30 = sshll.u32 %s204_s28, 4  ;;  %p1017_p0 = pnand %p591_p12, %p1227_p3  ;;  %s1021_s30 = int_to_ptr.vmem [resolvable:$true] %s212_s30 }
  0x3f   : > { %s683_s1 = scalar_lea.hbm %s1216_s0, 64 }
  0x40   : > { %p684_p10 = scmp.ne.s32.totalorder %s1216_s0, %s683_s1  ;;  %p685_p13 = pneg %p1017_p0 }
  0x41   : > { %p690_p9 = scmp.lt.u32.totalorder %s683_s1, %s1216_s0 }
  0x42   : > { %p686_p2 = pnand %p685_p13, %p684_p10 }
  0x44   : > { %p687_p4 = pneg %p686_p2 }
  0x46   : > { %p692_p12 = pnand %p690_p9, %p687_p4 }
  0x48   : > { %695 = shalt.err (!%p692_p12)
}
  0x49   : > { %s696_s21 = scalar_lea.vmem %s168_s20, 64  ;;  %p704_p1 = scmp.lt.s32.totalorder %s168_s20, %s168_s20 }
  0x4a   : > { %p697_p3 = scmp.ne.s32.totalorder %s168_s20, %s696_s21  ;;  %p705_p11 = scmp.lt.s32.totalorder %s696_s21, %s696_s21 }
  0x4c   : > { %p699_p7 = pnand %p697_p3, %p685_p13  ;;  %p706_p6 = por %p705_p11, %p704_p1 }
  0x4e   : > { %p700_p5 = pneg %p699_p7 }
  0x50   : > { %p707_p8 = pnand %p706_p6, %p700_p5 }
  0x52   : > { %710 = shalt.err (!%p707_p8)
}
  0x53   : > { %594 = dma.hbm_to_vmem [thread:$0]  (!%p1017_p0), %s1216_s0, 64, %s168_s20, [#allocation3]  }
  0x54   : > { %s711_s1 = scalar_lea.hbm %s1013_s10, 256  ;;  %p1247_p3 = scmp.ne.s32.totalorder %s1240_s9, 0 }
  0x55   : > { %p712_p10 = scmp.ne.s32.totalorder %s1013_s10, %s711_s1  ;;  %s716_s27 = scalar_lea.hbm %s1218_s2, 512 }
  0x56   : > { %p717_p6 = scmp.lt.u32.totalorder %s1013_s10, %s1218_s2  ;;  %p718_p8 = scmp.lt.u32.totalorder %s716_s27, %s711_s1 }
  0x57   : > { %p714_p7 = pnand %p712_p10, %p1247_p3  ;;  %p720_p5 = scmp.lt.u32.totalorder %s711_s1, %s1013_s10 }
  0x58   : > { %p719_p1 = por %p718_p8, %p717_p6 }
  0x59   : > { %p715_p13 = pneg %p714_p7 }
  0x5a   : > { %p721_p11 = por %p720_p5, %p719_p1 }
  0x5c   : > { %p722_p2 = pnand %p721_p11, %p715_p13 }
  0x5e   : > { %725 = shalt.err (!%p722_p2)
}
  0x5f   : > { %s726_s20 = scalar_lea.vmem %s1021_s30, 256  ;;  %s851_s28 = smov [#allocation7]  }
  0x60   : > { %p727_p0 = scmp.ne.s32.totalorder %s1021_s30, %s726_s20  ;;  %s731_s12 = sshll.u32 %s851_s28, 4  ;;  %s732_s12 = int_to_ptr.vmem [resolvable:$false] %s731_s12 }
  0x61   : > { %s733_s21 = scalar_lea.vmem %s732_s12, 512  ;;  %p734_p12 = scmp.lt.s32.totalorder %s1021_s30, %s732_s12 }
  0x62   : > { %p729_p4 = pnand %p727_p0, %p1247_p3  ;;  %p735_p10 = scmp.lt.s32.totalorder %s733_s21, %s726_s20 }
  0x64   : > { %p730_p9 = pneg %p729_p4  ;;  %p736_p7 = por %p735_p10, %p734_p12 }
  0x66   : > { %p737_p6 = pnand %p736_p7, %p730_p9 }
  0x68   : > { %740 = shalt.err (!%p737_p6)
}
  0x69   : > { %s852_s17 = smov 64   ;;  %s853_s22 = smov 4  }
  0x6a   : > { %p1248_p13 = scmp.ne.s32.totalorder %s1239_s6, 0  ;;  %s1249_s1 = sshll.u32 %s845_s18, 7 }
  0x6b   : > { %s1066_s27 = scalar_lea.hbm %s1219_s3, %s1249_s1  ;;  %s1250_s14 = sshll.u32 %s923_s24, 3 }
  0x6c   : > { %601 = dma.hbm_to_vmem [thread:$0]  (!%p1248_p13), %s1013_s10, 256, %s1021_s30, %s942_s7, %s852_s17, %s852_s17, %s853_s22  }
  0x6d   : > { %s226_s25 = scalar_lea.vmem [#allocation8], %s1250_s14  ;;  %s223_s28 = scalar_lea.sflag [#allocation9], %s923_s24 }
  0x6e   : > { %s234_s20 = sshll.u32 %s226_s25, 4  ;;  %s741_s12 = scalar_lea.hbm %s1066_s27, 128  ;;  %s1070_s20 = int_to_ptr.vmem [resolvable:$true] %s234_s20 }
  0x6f   : > { %p742_p8 = scmp.ne.s32.totalorder %s1066_s27, %s741_s12  ;;  %s746_s10 = scalar_lea.hbm %s1219_s3, 256 }
  0x70   : > { %p747_p11 = scmp.lt.u32.totalorder %s1066_s27, %s1219_s3  ;;  %p748_p2 = scmp.lt.u32.totalorder %s746_s10, %s741_s12 }
  0x71   : > { %p744_p1 = pnand %p742_p8, %p1247_p3  ;;  %p750_p4 = scmp.lt.u32.totalorder %s741_s12, %s1066_s27 }
  0x72   : > { %p749_p0 = por %p748_p2, %p747_p11 }
  0x73   : > { %p745_p5 = pneg %p744_p1 }
  0x74   : > { %p751_p9 = por %p750_p4, %p749_p0 }
  0x76   : > { %p752_p12 = pnand %p751_p9, %p745_p5 }
  0x78   : > { %755 = shalt.err (!%p752_p12)
}
  0x79   : > { %s756_s22 = scalar_lea.vmem %s1070_s20, 128  ;;  %s854_s1 = smov [#allocation8]  }
  0x7a   : > { %p757_p10 = scmp.ne.s32.totalorder %s1070_s20, %s756_s22  ;;  %s761_s26 = sshll.u32 %s854_s1, 4  ;;  %s762_s26 = int_to_ptr.vmem [resolvable:$false] %s761_s26 }
  0x7b   : > { %s763_s23 = scalar_lea.vmem %s762_s26, 256  ;;  %p764_p8 = scmp.lt.s32.totalorder %s1070_s20, %s762_s26 }
  0x7c   : > { %p759_p7 = pnand %p757_p10, %p1247_p3  ;;  %p765_p1 = scmp.lt.s32.totalorder %s763_s23, %s756_s22 }
  0x7e   : > { %p760_p6 = pneg %p759_p7  ;;  %p766_p11 = por %p765_p1, %p764_p8 }
  0x80   : > { %p767_p2 = pnand %p766_p11, %p760_p6 }
  0x82   : > { %770 = shalt.err (!%p767_p2)
}
  0x83   : > { %s1251_s14 = smov 2   ;;  %s1252_s25 = smov 32  }
  0x84   : > { %604 = dma.hbm_to_vmem [thread:$0]  (!%p1248_p13), %s1066_s27, 128, %s1070_s20, %s223_s28, %s1252_s25, %s1252_s25, %s1251_s14  }
  0x85   : > { %p1253_p3 = scmp.ne.s32.totalorder %s1245_s13, 0 }
  0x86   : > { %p1254_p5 = scmp.eq.s32.totalorder (!%p1253_p3), %s976_s8, 0 }
  0x87   : > { %246 = sbr.rel (%p1253_p3) target bundleno = 183 (0xb7), region = 36 }
  0x8e   : > { %816 = dma.done.wait (%p1254_p5), [#allocation3], 64   ;;  %p1255_p0 = pmov %p1254_p5 }
  0x8f   : > { %s252_s6 = sand.u32 1, %s976_s8   ;;  %s1107_s9 = sand.u32 1, %s837_s16  }
  0x90   : > { %818 = vsyncadd (%p1255_p0), [#allocation3], 4294967232  ;;  %s554_s24 = sshll.u32 %s1107_s9, 3  ;;  %s253_s12 = scalar_lea.sflag [#allocation6], %s252_s6 }
  0x91   : > { %s256_s7 = scalar_lea.vmem [#allocation5], %s554_s24  ;;  %p1256_p13 = scmp.ne.s32.totalorder %s1241_s11, 0 }
  0x93   : > { %820 = dma.done.wait (%p1256_p13), %s253_s12, 384  }
  0x94   : > { %822 = vsyncadd (%p1256_p13), %s253_s12, 4294966912  ;;  %s555_s13 = sshll.u32 %s1107_s9, 4  ;;  %s271_s20 = scalar_lea.sflag [#allocation9], %s1107_s9 }
  0x95   : > { %s265_s27 = scalar_lea.vmem [#allocation7], %s555_s13  ;;  %s1116_s28 = scalar_lea.vmem [#allocation8], %s554_s24 }
  0x96   : > { %824 = dma.done.wait (%p1256_p13), %s271_s20, 128  }
  0x97   : > { %826 = vsyncadd (%p1256_p13), %s271_s20, 4294967168  ;;  %s557_s30 = sshll.u32 %s1107_s9, 5  ;;  %v317_v0 = vlaneseq  ;;  %v855_v1 = vmov 1983009808   ;;  %s578_s10 = sshll.u32 %s976_s8, 9 }
  0x98   : > { %v342_v2 = vunpack.c.l.s4 %v855_v1  ;;  %s1128_s21 = scalar_lea.vmem [#allocation10], %s557_s30  ;;  %v313_v6 = vld [vmem:[%s256_s7] sm:$0x3]  ;;  %v314_v7 = vld [vmem:[%s256_s7 + $0x2] sm:$0x3]  ;;  %s1164_s1 = scalar_lea.hbm %s1220_s4, %s578_s10 }
  0x99   : > { %v345_v4 = vshrl.u32 %v317_v0, 7  ;;  %vm1123_vm0 = vcmp.lt.s32.totalorder %v317_v0, 256  ;;  %s408_s11 = sshll.u32 %s1128_s21, 4  ;;  %v315_v8 = vld [vmem:[%s256_s7 + $0x4] sm:$0x3]  ;;  %s394_s26 = scalar_lea.sflag [#allocation4], %s1107_s9  ;;  %s1168_s11 = int_to_ptr.vmem [resolvable:$true] %s408_s11 }
  0x9a   : > { %v343_v3 = vunpack.c.0.s8 %v342_v2  ;;  %321 = vst.msk [vmem:[%s1128_s21] ss:$4 sm:$0x3] %vm1123_vm0, %v313_v6  ;;  %558 = vst.msk [vmem:[%s1128_s21 + $0x8] ss:$4 sm:$0x3] %vm1123_vm0, %v314_v7 }
  0x9b   : > { %559 = vst.msk [vmem:[%s1128_s21 + $0x10] ss:$4 sm:$0x3] %vm1123_vm0, %v315_v8  ;;  %v316_v10 = vld [vmem:[%s256_s7 + $0x6] sm:$0x3]  ;;  %s771_s8 = scalar_lea.vmem %s1168_s11, 512 }
  0x9c   : > { %v346_v9 = vsub.s32 %v343_v3, %v345_v4  ;;  %v328_v11 = vld [vmem:[%s265_s27] sm:$0xf]  ;;  %v332_v12 = vld [vmem:[#allocation2] sm:$0xf]  ;;  %v329_v14 = vld [vmem:[%s265_s27 + $0x4] sm:$0xf]  ;;  %p772_p4 = scmp.ne.s32.totalorder %s1168_s11, %s771_s8 }
  0x9d   : > { %560 = vst.msk [vmem:[%s1128_s21 + $0x18] ss:$4 sm:$0x3] %vm1123_vm0, %v316_v10  ;;  %v333_v13 = vadd.f32 %v332_v12, %v328_v11  ;;  %v330_v15 = vld [vmem:[%s265_s27 + $0x8] sm:$0xf]  ;;  %v334_v17 = vadd.f32 %v332_v12, %v329_v14  ;;  %p1259_p9 = scmp.ne.s32.totalorder %s1243_s29, 0 }
  0x9e   : > { %v331_v16 = vld [vmem:[%s265_s27 + $0xc] sm:$0xf]  ;;  %v335_v18 = vadd.f32 %v332_v12, %v330_v15  ;;  %v381_v20 = vld [vmem:[%s1116_s28] sm:$0x3]  ;;  %v382_v21 = vld [vmem:[%s1116_s28 + $0x2] sm:$0x3] }
  0x9f   : > { %v336_v19 = vadd.f32 %v332_v12, %v331_v16  ;;  %v383_v22 = vld [vmem:[%s1116_s28 + $0x4] sm:$0x3]  ;;  %v347_v23 = vrot.slane %v333_v13, %v346_v9  ;;  %561 = vst.msk [vmem:[%s1128_s21 + $0x3] ss:$4 sm:$0x3] %vm1123_vm0, %v381_v20  ;;  %v354_v25 = vrot.slane %v334_v17, %v346_v9  ;;  %p773_p12 = pnand %p772_p4, %p1259_p9  ;;  %s856_s23 = smov [#allocation10]  }
  0xa0   : > { %562 = vst.msk [vmem:[%s1128_s21 + $0xb] ss:$4 sm:$0x3] %vm1123_vm0, %v382_v21  ;;  %563 = vst.msk [vmem:[%s1128_s21 + $0x13] ss:$4 sm:$0x3] %vm1123_vm0, %v383_v22  ;;  %v361_v26 = vrot.slane %v335_v18, %v346_v9 }
  0xa1   : > { %v384_v24 = vld [vmem:[%s1116_s28 + $0x6] sm:$0x3]  ;;  %v368_v27 = vrot.slane %v336_v19, %v346_v9  ;;  %v369_v28 = vrot.slane %v347_v23, 7  ;;  %v370_v29 = vrot.slane %v354_v25, 7  ;;  %p774_p10 = pneg %p773_p12  ;;  %s775_s14 = sshll.u32 %s856_s23, 4  ;;  %s776_s14 = int_to_ptr.vmem [resolvable:$false] %s775_s14 }
  0xa2   : > { %564 = vst.msk [vmem:[%s1128_s21 + $0x1b] ss:$4 sm:$0x3] %vm1123_vm0, %v384_v24  ;;  %v371_v30 = vrot.slane %v361_v26, 7  ;;  %s777_s25 = scalar_lea.vmem %s776_s14, 1024  ;;  %p778_p7 = scmp.lt.s32.totalorder %s1168_s11, %s776_s14 }
  0xa3   : > { %v372_v31 = vrot.slane %v368_v27, 7  ;;  %377 = vst [vmem:[%s1128_s21] sm:$0x66] %v369_v28  ;;  %378 = vst [vmem:[%s1128_s21 + $0x8] sm:$0x66] %v370_v29  ;;  %p779_p6 = scmp.lt.s32.totalorder %s777_s25, %s771_s8 }
  0xa4   : > { %379 = vst [vmem:[%s1128_s21 + $0x10] sm:$0x66] %v371_v30 }
  0xa5   : > { %380 = vst [vmem:[%s1128_s21 + $0x18] sm:$0x66] %v372_v31  ;;  %p780_p8 = por %p779_p6, %p778_p7 }
  0xa7   : > { %p781_p1 = pnand %p780_p8, %p774_p10 }
  0xa9   : > { %784 = shalt.err (!%p781_p1)
}
  0xaa   : > { %s785_s6 = scalar_lea.hbm %s1164_s1, 512  ;;  %s789_s7 = scalar_lea.hbm %s1220_s4, 1024 }
  0xab   : > { %p786_p11 = scmp.ne.s32.totalorder %s1164_s1, %s785_s6  ;;  %p790_p5 = scmp.lt.u32.totalorder %s1164_s1, %s1220_s4 }
  0xac   : > { %p791_p0 = scmp.lt.u32.totalorder %s789_s7, %s785_s6  ;;  %p793_p4 = scmp.lt.u32.totalorder %s785_s6, %s1164_s1 }
  0xad   : > { %p787_p2 = pnand %p786_p11, %p1259_p9 }
  0xae   : > { %p792_p13 = por %p791_p0, %p790_p5 }
  0xaf   : > { %p788_p3 = pneg %p787_p2 }
  0xb0   : > { %p794_p12 = por %p793_p4, %p792_p13 }
  0xb2   : > { %p795_p10 = pnand %p794_p12, %p788_p3 }
  0xb4   : > { %798 = shalt.err (!%p795_p10)
}
  0xb5   : > { %s857_s20 = smov 128   ;;  %s858_s28 = smov 8  }
  0xb6   : > { %589 = dma.vmem_to_hbm [thread:$0]  (%p1259_p9), %s1168_s11, 512, %s1164_s1, %s394_s26, %s857_s20, %s857_s20, %s858_s28  }
  0xb7 PF: > { %s423_s30 = sand.u32 1, %s833_s15   ;;  %p1260_p7 = scmp.ne.s32.totalorder %s1244_s5, 0 }
  0xb8   : > { %p1261_p6 = scmp.ge.s32.totalorder %s845_s18, 2  ;;  %s424_s10 = scalar_lea.sflag [#allocation4], %s423_s30 }
  0xba   : > { %p606_p8 = pnand %p1261_p6, %p1260_p7 }
  0xbc   : > { %828 = dma.done.wait (!%p606_p8), %s424_s10, 512  }
  0xbd   : > { %830 = vsyncadd (!%p606_p8), %s424_s10, 4294966784  ;;  %s1262_s21 = sld [smem:[#allocation15_spill]]  ;;  %s1263_s17 = sld [smem:[#allocation16_spill]] }
  0xbe   : > { %p21_p1 = scmp.ge.s32.totalorder %s905_s19, 4   ;;  %s1264_s15 = smov %s837_s16 }
  0xbf   : > { %s1266_s18 = smov %s905_s19 }
  0xc0   :  { %23 = sbr.rel (!%p21_p1) target bundleno = 10 (0xa), region = 117 }
  0xc3   : > { %s1265_s16 = smov %s1262_s21 }
  0xc7   :  { %429 = vsyncpa [#allocation3], 1 }
  0xc8   :  { %431 = vsyncpa [#allocation3 + $0x1], 1 }
  0xc9   :  { %432 = vsyncpa [#allocation6], 1 }
  0xca   :  { %434 = vsyncpa [#allocation6 + $0x1], 1 }
  0xcb   :  { %435 = vsyncpa [#allocation9], 1 }
  0xcc   :  { %437 = vsyncpa [#allocation9 + $0x1], 1 }
  0xcd   :  { %438 = vsyncpa [#allocation4], 1 }
  0xce   :  { %440 = vsyncpa [#allocation4 + $0x1], 1 }

</bundles_post_ra>
